<compile_context>
chip_gen: v7x
topology: tpu7x:2x2x1
jax: 0.10.0
libtpu: 0.0.40
codegen_flags: <defaults>
</compile_context>

<pallas_src>
import jax
import jax.numpy as jnp
from jax import lax
from jax.experimental import pallas as pl
from jax.experimental.pallas import tpu as pltpu
import numpy as np

SIGMA_DATA = 0.2      # StyleTTS2 default diffusion_sigma_data
LANES = 128

# Columns of the per-batch EDM weight table (SMEM input).
_SIG, _CSKIP, _COUT, _CIN, _CNOISE, _LW = range(6)


def _make_kdiffusion_kernel(T, TT):
    """Kernel closure over static true length T and time tile TT."""
    masked = (T % TT) != 0    # only trace the tail mask when padding exists

    def kernel(ew_ref, x_ref, n_ref, p_ref, acc_ref):
        b = pl.program_id(0)          # batch element   (parallel axis)
        t = pl.program_id(1)          # time tile index (serial accumulation axis)

        @pl.when(t == 0)
        def _():
            acc_ref[...] = jnp.zeros_like(acc_ref)

        x = x_ref[...].astype(jnp.float32)        # (C, TT) clean signal tile
        noise = n_ref[...].astype(jnp.float32)    # (C, TT) gaussian noise tile
        C = x.shape[0]

        # --- per-batch EDM scale weights: scalar SMEM reads, no vector math -----
        sig = ew_ref[b, _SIG]
        c_skip = ew_ref[b, _CSKIP]
        c_out = ew_ref[b, _COUT]
        c_in = ew_ref[b, _CIN]
        c_noise = ew_ref[b, _CNOISE]
        loss_w = ew_ref[b, _LW]

        # --- noising ------------------------------------------------------------
        x_noisy = x + sig * noise

        # --- denoiser -------------------------------------------------------------
        # TODO(synk): Model1d.__init__ leaves self.unet = None; the real UNet1d is
        # replaced by a synthetic noise-conditioned channel-mixing net
        #   net(z, c_noise) = tanh(W @ z + b + c_noise)
        # (a real UNet1d with large C would need MXU-shaped C/K tiling + bf16 operands).
        w = p_ref[:, :C]                           # (C, C) weight slice
        bias = p_ref[:, C:C + 1]                   # (C, 1) bias slice
        h = jnp.dot(w, c_in * x_noisy, preferred_element_type=jnp.float32)
        x_pred = jnp.tanh(h + bias + c_noise)
        x_den = c_skip * x_noisy + c_out * x_pred

        # --- weighted squared error ----------------------------------------------
        d = x_den - x
        wse = d * d * loss_w                       # (C, TT)

        if masked:
            # zero the padded tail lanes of the last tile
            lane = lax.broadcasted_iota(jnp.int32, (1, TT), 1)
            valid = (t * TT + lane) < T
            wse = jnp.where(valid, wse, 0.0)

        # lane-dense per-batch partial sums: sublane reduce only; no cross-lane
        # reduce / scalar broadcast in the hot loop.
        acc_ref[...] += jnp.sum(wse, axis=0, keepdims=True)   # (1, TT)

    return kernel


def _pick_time_tile(T, C, itemsize, tile_budget_bytes=1 << 20):
    """Largest 128-multiple time tile such that one (C, TT) input tile stays within
    a ~1 MiB per-input budget (2 inputs x 2 pipeline buffers + elementwise
    temporaries then fit comfortably inside scoped VMEM on v5e/v6e/v7x)."""
    t_up = pl.cdiv(T, LANES) * LANES
    cap = max(LANES, (tile_budget_bytes // (C * itemsize)) // LANES * LANES)
    return int(min(t_up, cap))


def model1d_forward(x, noise, sigmas, w_net, b_net):
    """Model1d.forward(x) -> scalar diffusion (KDiffusion/EDM) training loss."""
    B, C, T = x.shape
    itemsize = jnp.dtype(x.dtype).itemsize
    TT = _pick_time_tile(T, C, itemsize)
    T_pad = pl.cdiv(T, TT) * TT
    nT = T_pad // TT

    if T_pad != T:
        # Pad the ragged time tail once; the kernel masks padded lanes so they
        # contribute nothing to the loss.
        pad = ((0, 0), (0, 0), (0, T_pad - T))
        x = jnp.pad(x, pad)
        noise = jnp.pad(noise, pad)

    # Per-batch scalar EDM weights (KDiffusion.get_scale_weights + loss weight),
    # computed once here (B elements) instead of per lane inside the kernel.
    sig = sigmas.astype(jnp.float32)
    sd2 = jnp.float32(SIGMA_DATA * SIGMA_DATA)
    sig2 = sig * sig
    denom = sig2 + sd2
    root = jnp.sqrt(denom)                         # exact sqrt (small-sigma accuracy)
    ew = jnp.stack(
        [sig,
         sd2 / denom,                              # c_skip
         sig * SIGMA_DATA / root,                  # c_out
         1.0 / root,                               # c_in
         0.25 * jnp.log(sig),                      # c_noise (sigma>0: lognormal sampler)
         denom / (sig2 * sd2)],                    # loss_weight
        axis=1)                                    # (B, 6) -> SMEM

    # Fold weight and bias into one (C, C+1) VMEM block.
    params = jnp.concatenate([w_net, b_net], axis=1).astype(jnp.float32)

    kernel = _make_kdiffusion_kernel(T, TT)

    partial = pl.pallas_call(
        kernel,
        out_shape=jax.ShapeDtypeStruct((B, 1, TT), jnp.float32),
        grid=(B, nT),
        in_specs=[
            pl.BlockSpec(memory_space=pltpu.MemorySpace.SMEM),        # (B, 6) EDM weights
            pl.BlockSpec((None, C, TT), lambda b, t: (b, 0, t)),      # x tile     (C, TT)
            pl.BlockSpec((None, C, TT), lambda b, t: (b, 0, t)),      # noise tile (C, TT)
            pl.BlockSpec((C, C + 1), lambda b, t: (0, 0)),            # [W | b], shared
        ],
        out_specs=pl.BlockSpec((None, 1, TT), lambda b, t: (b, 0, 0)),  # per-b accumulator
        compiler_params=pltpu.CompilerParams(
            dimension_semantics=("parallel", "arbitrary"),   # batch across v7x cores
            vmem_limit_bytes=32 << 20),
    )(ew, x, noise, params)

    # Tiny final reduction (B * TT elements) + global 1/(B*C*T) normalisation.
    return jnp.sum(partial) / jnp.float32(B * C * T)


def reference_forward(x, noise, sigmas, w_net, b_net, sd=SIGMA_DATA):
    """Pure-JAX reference of the same KDiffusion forward."""
    sig = sigmas[:, None, None]
    x_noisy = x + sig * noise
    c_skip = sd**2 / (sig**2 + sd**2)
    c_out = sig * sd / jnp.sqrt(sig**2 + sd**2)
    c_in = 1.0 / jnp.sqrt(sig**2 + sd**2)
    c_noise = 0.25 * jnp.log(sig)
    x_pred = jnp.tanh(jnp.einsum("oc,bct->bot", w_net, c_in * x_noisy)
                      + b_net[None] + c_noise)
    x_den = c_skip * x_noisy + c_out * x_pred
    losses = jnp.mean((x_den - x) ** 2, axis=(1, 2))
    lw = (sigmas**2 + sd**2) / (sigmas * sd) ** 2
    return jnp.mean(losses * lw)


if __name__ == "__main__":
    base = jax.random.PRNGKey(0)
    cases = [
        ((2, 8, 256), jnp.float32),     # tile divides T exactly
        ((3, 8, 200), jnp.float32),     # ragged T -> pad + in-kernel tail mask
        ((2, 16, 384), jnp.bfloat16),   # bf16 activations/noise DMA'd as bf16
    ]
    for idx, ((B, C, T), dt) in enumerate(cases):
        kx, kn, ks, kw = jax.random.split(jax.random.fold_in(base, idx), 4)
        x = jax.random.normal(kx, (B, C, T), dtype=jnp.float32)
        noise = jax.random.normal(kn, (B, C, T), dtype=jnp.float32)   # torch.randn_like(x)
        # LogNormalDistribution(mean=-3.0, std=1.0) sigma draws (StyleTTS2 default)
        sigmas = jnp.exp(-3.0 + 1.0 * jax.random.normal(ks, (B,), dtype=jnp.float32))
        # deterministic synthetic denoiser parameters
        w_net = jax.random.normal(kw, (C, C), dtype=jnp.float32) / jnp.sqrt(C)
        b_net = jnp.zeros((C, 1), dtype=jnp.float32)

        x_in = x.astype(dt)
        n_in = noise.astype(dt)
        loss = jax.block_until_ready(model1d_forward(x_in, n_in, sigmas, w_net, b_net))
        # reference consumes the same (possibly bf16-rounded) values, upcast to f32
        ref = reference_forward(x_in.astype(jnp.float32), n_in.astype(jnp.float32),
                                sigmas, w_net, b_net)
        np.testing.assert_allclose(np.asarray(loss), np.asarray(ref),
                                   rtol=1e-4, atol=1e-5)

    print("KERNEL_OK")
</pallas_src>

<mosaic_0001>
module attributes {stable_mosaic.version = 11 : i64} {
  func.func @kernel(%arg0: i32, %arg1: i32, %arg2: memref<2x6xf32, #tpu.memory_space<smem>>, %arg3: memref<1x8x256xf32, #tpu.memory_space<vmem>>, %arg4: memref<1x8x256xf32, #tpu.memory_space<vmem>>, %arg5: memref<8x9xf32, #tpu.memory_space<vmem>>, %arg6: memref<1x1x256xf32, #tpu.memory_space<vmem>>) attributes {dimension_semantics = [#tpu.dimension_semantics<parallel>, #tpu.dimension_semantics<arbitrary>], iteration_bounds = array<i64: 2, 1>, scalar_prefetch = 0 : i64, scratch_operands = 0 : i64, tpu.core_type = #tpu.core_type<tc>, window_params = [{transform_indices = @transform_0, window_bounds = array<i64: 2, 6>}, {transform_indices = @transform_1, window_bounds = array<i64: 1, 8, 256>}, {transform_indices = @transform_2, window_bounds = array<i64: 1, 8, 256>}, {pipeline_mode = #tpu.pipeline_mode<synchronous>, transform_indices = @transform_3, window_bounds = array<i64: 8, 9>}, {transform_indices = @transform_4, window_bounds = array<i64: 1, 1, 256>}]} {
    %c0_i32 = arith.constant 0 : i32
    %0 = arith.cmpi eq, %arg1, %c0_i32 : i32
    %1 = arith.extui %0 : i1 to i32
    %c0_i32_0 = arith.constant 0 : i32
    %2 = arith.cmpi ne, %1, %c0_i32_0 : i32
    scf.if %2 {
      %cst_17 = arith.constant 0.000000e+00 : f32
      %49 = vector.broadcast %cst_17 : f32 to vector<1x256xf32>
      %c0_18 = arith.constant 0 : index
      %c0_19 = arith.constant 0 : index
      %c0_20 = arith.constant 0 : index
      %50 = vector.load %arg6[%c0_18, %c0_19, %c0_20] : memref<1x1x256xf32, #tpu.memory_space<vmem>>, vector<1x1x256xf32>
      %51 = vector.shape_cast %50 : vector<1x1x256xf32> to vector<1x256xf32>
      %52 = vector.shape_cast %49 : vector<1x256xf32> to vector<1x1x256xf32>
      tpu.vector_store %arg6[%c0_18, %c0_19, %c0_20], %52 {strides = array<i32>} : memref<1x1x256xf32, #tpu.memory_space<vmem>>, vector<1x1x256xf32>,
    } else {
    }
    %c0 = arith.constant 0 : index
    %c0_1 = arith.constant 0 : index
    %c0_2 = arith.constant 0 : index
    %3 = vector.load %arg3[%c0, %c0_1, %c0_2] : memref<1x8x256xf32, #tpu.memory_space<vmem>>, vector<1x8x256xf32>
    %4 = vector.shape_cast %3 : vector<1x8x256xf32> to vector<8x256xf32>
    %c0_3 = arith.constant 0 : index
    %c0_4 = arith.constant 0 : index
    %c0_5 = arith.constant 0 : index
    %5 = vector.load %arg4[%c0_3, %c0_4, %c0_5] : memref<1x8x256xf32, #tpu.memory_space<vmem>>, vector<1x8x256xf32>
    %6 = vector.shape_cast %5 : vector<1x8x256xf32> to vector<8x256xf32>
    %7 = arith.index_cast %arg0 : i32 to index
    %c0_6 = arith.constant 0 : index
    %8 = memref.load %arg2[%7, %c0_6] : memref<2x6xf32, #tpu.memory_space<smem>>
    %9 = arith.index_cast %arg0 : i32 to index
    %c1 = arith.constant 1 : index
    %10 = memref.load %arg2[%9, %c1] : memref<2x6xf32, #tpu.memory_space<smem>>
    %11 = arith.index_cast %arg0 : i32 to index
    %c2 = arith.constant 2 : index
    %12 = memref.load %arg2[%11, %c2] : memref<2x6xf32, #tpu.memory_space<smem>>
    %13 = arith.index_cast %arg0 : i32 to index
    %c3 = arith.constant 3 : index
    %14 = memref.load %arg2[%13, %c3] : memref<2x6xf32, #tpu.memory_space<smem>>
    %15 = arith.index_cast %arg0 : i32 to index
    %c4 = arith.constant 4 : index
    %16 = memref.load %arg2[%15, %c4] : memref<2x6xf32, #tpu.memory_space<smem>>
    %17 = arith.index_cast %arg0 : i32 to index
    %c5 = arith.constant 5 : index
    %18 = memref.load %arg2[%17, %c5] : memref<2x6xf32, #tpu.memory_space<smem>>
    %19 = vector.broadcast %8 : f32 to vector<8x256xf32>
    %20 = arith.mulf %19, %6 : vector<8x256xf32>
    %21 = arith.addf %4, %20 : vector<8x256xf32>
    %c0_7 = arith.constant 0 : index
    %c0_8 = arith.constant 0 : index
    %22 = vector.load %arg5[%c0_7, %c0_8] : memref<8x9xf32, #tpu.memory_space<vmem>>, vector<8x8xf32>
    %c0_9 = arith.constant 0 : index
    %c8 = arith.constant 8 : index
    %23 = vector.load %arg5[%c0_9, %c8] : memref<8x9xf32, #tpu.memory_space<vmem>>, vector<8x1xf32>
    %24 = vector.broadcast %14 : f32 to vector<8x256xf32>
    %25 = arith.mulf %24, %21 : vector<8x256xf32>
    %cst = arith.constant dense<0.000000e+00> : vector<8x256xf32>
    %26 = tpu.matmul %22, %25, %cst {dimension_numbers = #tpu.dot_dimension_numbers<[1], [0], [0], [1], [0, 0, 1, 1], [], []>} : vector<8x8xf32>, vector<8x256xf32>, vector<8x256xf32> -> vector<8x256xf32>
    %27 = vector.broadcast %23 : vector<8x1xf32> to vector<8x256xf32>
    %28 = arith.addf %26, %27 : vector<8x256xf32>
    %29 = vector.broadcast %16 : f32 to vector<8x256xf32>
    %30 = arith.addf %28, %29 : vector<8x256xf32>
    %31 = math.tanh %30 : vector<8x256xf32>
    %32 = vector.broadcast %10 : f32 to vector<8x256xf32>
    %33 = arith.mulf %32, %21 : vector<8x256xf32>
    %34 = vector.broadcast %12 : f32 to vector<8x256xf32>
    %35 = arith.mulf %34, %31 : vector<8x256xf32>
    %36 = arith.addf %33, %35 : vector<8x256xf32>
    %37 = arith.subf %36, %4 : vector<8x256xf32>
    %38 = arith.mulf %37, %37 : vector<8x256xf32>
    %39 = vector.broadcast %18 : f32 to vector<8x256xf32>
    %40 = arith.mulf %38, %39 : vector<8x256xf32>
    %c0_10 = arith.constant 0 : index
    %c0_11 = arith.constant 0 : index
    %c0_12 = arith.constant 0 : index
    %41 = vector.load %arg6[%c0_10, %c0_11, %c0_12] : memref<1x1x256xf32, #tpu.memory_space<vmem>>, vector<1x1x256xf32>
    %42 = vector.shape_cast %41 : vector<1x1x256xf32> to vector<1x256xf32>
    %cst_13 = arith.constant dense<0.000000e+00> : vector<256xf32>
    %43 = vector.multi_reduction <add>, %40, %cst_13 [0] : vector<8x256xf32> to vector<256xf32>
    %44 = vector.shape_cast %43 : vector<256xf32> to vector<1x256xf32>
    %45 = arith.addf %42, %44 : vector<1x256xf32>
    %c0_14 = arith.constant 0 : index
    %c0_15 = arith.constant 0 : index
    %c0_16 = arith.constant 0 : index
    %46 = vector.load %arg6[%c0_14, %c0_15, %c0_16] : memref<1x1x256xf32, #tpu.memory_space<vmem>>, vector<1x1x256xf32>
    %47 = vector.shape_cast %46 : vector<1x1x256xf32> to vector<1x256xf32>
    %48 = vector.shape_cast %45 : vector<1x256xf32> to vector<1x1x256xf32>
    tpu.vector_store %arg6[%c0_14, %c0_15, %c0_16], %48 {strides = array<i32>} : memref<1x1x256xf32, #tpu.memory_space<vmem>>, vector<1x1x256xf32>,
    return
  }
  func.func @transform_0(%arg0: i32, %arg1: i32) -> (i32, i32) {
    %c0_i32 = arith.constant 0 : i32
    %c0_i32_0 = arith.constant 0 : i32
    %c0_i32_1 = arith.constant 0 : i32
    return %c0_i32, %c0_i32_0 : i32, i32
  }
  func.func @transform_1(%arg0: i32, %arg1: i32) -> (i32, i32, i32) {
    %c0_i32 = arith.constant 0 : i32
    %c0_i32_0 = arith.constant 0 : i32
    return %arg0, %c0_i32, %arg1 : i32, i32, i32
  }
  func.func @transform_2(%arg0: i32, %arg1: i32) -> (i32, i32, i32) {
    %c0_i32 = arith.constant 0 : i32
    %c0_i32_0 = arith.constant 0 : i32
    return %arg0, %c0_i32, %arg1 : i32, i32, i32
  }
  func.func @transform_3(%arg0: i32, %arg1: i32) -> (i32, i32) {
    %c0_i32 = arith.constant 0 : i32
    %c0_i32_0 = arith.constant 0 : i32
    %c0_i32_1 = arith.constant 0 : i32
    return %c0_i32, %c0_i32_0 : i32, i32
  }
  func.func @transform_4(%arg0: i32, %arg1: i32) -> (i32, i32, i32) {
    %c0_i32 = arith.constant 0 : i32
    %c0_i32_0 = arith.constant 0 : i32
    %c0_i32_1 = arith.constant 0 : i32
    return %arg0, %c0_i32, %c0_i32_0 : i32, i32, i32
  }
}

</mosaic_0001>

<bundles_post_ra>
// kernel: tpu_custom_call.1
= control target key start
LH: loop header
LB: loop body
LE: loop exit
PB: predicated region body
PF: predicated region fallthrough
CT: control target
= control target key end

     0   :  { %s1188_s0 = inlined_call_operand.hbm [shape: f32[2,6], index: 0, kind: input, shape index: {}]   ;;  %s1189_s1 = inlined_call_operand.hbm [shape: f32[2,8,256], index: 1, kind: input, shape index: {}]   ;;  %s1190_s2 = inlined_call_operand.hbm [shape: f32[2,8,256], index: 2, kind: input, shape index: {}]   ;;  %s1191_s3 = inlined_call_operand.vmem [shape: f32[8,9], index: 3, kind: input, shape index: {}]   ;;  %s1192_s4 = inlined_call_operand.hbm [shape: f32[2,1,256], index: 4, kind: output, shape index: {}]  }
   0x1   :  { %1200 = sst [smem:[#allocation15_spill]] %s1188_s0 }
   0x2   :  { %1201 = sst [smem:[#allocation16_spill]] %s1189_s1 }
   0x3   :  { %9 = vsyncpa [#allocation5], 0 }
   0x4   :  { %10 = vsyncpa [#allocation3], 0 }
   0x5   :  { %12 = vsyncpa [#allocation3 + $0x1], 0 }
   0x6   :  { %13 = vsyncpa [#allocation8], 0 }
   0x7   :  { %15 = vsyncpa [#allocation8 + $0x1], 0 }
   0x8   :  { %16 = vsyncpa [#allocation4], 0 }
   0x9   :  { %18 = vsyncpa [#allocation4 + $0x1], 0  ;;  %s899_s15 = smov 0   ;;  %s901_s16 = smov 0  }
   0xa   :  { %s903_s17 = smov 0   ;;  %s905_s18 = smov 0  }
   0xb   :  { %s907_s19 = smov 0   ;;  %s909_s20 = smov 0  }
   0xc LB: > { %s590_s21 = sadd.s32 4294967295, %s865_s20   ;;  %s591_s22 = sadd.s32 4294967294, %s865_s20   ;;  %s865_s20 = sphi %s909_s20, %s24_s20   ;;  %s861_s19 = sphi %s907_s19, %s1228_s19   ;;  %s857_s18 = sphi %s905_s18, %s1227_s18   ;;  %s853_s17 = sphi %s903_s17, %s1226_s17   ;;  %s849_s16 = sphi %s901_s16, %s1225_s16   ;;  %s845_s15 = sphi %s899_s15, %s1224_s15  }
   0xd   : > { %p73_p0 = scmp.ne.s32.totalorder %s853_s17, %s849_s16  ;;  %p79_p1 = scmp.ne.s32.totalorder %s849_s16, %s845_s15 }
   0xe   : > { %p935_p2 = scmp.eq.s32.totalorder %s590_s21, 0  ;;  %p152_p3 = scmp.eq.s32.totalorder %s590_s21, 1 }
   0xf   : > { %p158_p4 = scmp.eq.s32.totalorder %s591_s22, 1  ;;  %p592_p5 = scmp.ge.s32.totalorder %s865_s20, 1 }
  0x10   : > { %s1202_s23 = scalar_select %p935_p2, 1, 0 }
  0x11   : > { %p942_p6 = por %p935_p2, %p79_p1  ;;  %p949_p7 = por %p152_p3, %p73_p0 }
  0x12   : > { %p953_p8 = por %p158_p4, %p79_p1  ;;  %p165_p9 = scmp.lt.s32.totalorder %s865_s20, 3 }
  0x13   : > { %s1203_s24 = scalar_select %p942_p6, 1, 0 }
  0x14   : > { %s1204_s25 = scalar_select %p949_p7, 1, 0 }
  0x15   : > { %s1205_s26 = scalar_select %p953_p8, 1, 0 }
  0x16   : > { %p958_p10 = pnand %p592_p5, %p165_p9  ;;  %s66_s28 = sadd.s32 1, %s853_s17 }
  0x17   : > { %s36_s29 = sadd.s32 1, %s861_s19  ;;  %p74_p13 = scmp.eq.s32.totalorder %s865_s20, 0 }
  0x18   : > { %s1206_s27 = scalar_select %p958_p10, 1, 0 }
  0x19   : > { %p626_p12 = pneg %p958_p10  ;;  %p974_p1 = scmp.ge.s32.totalorder %s36_s29, 2 }
  0x1a   : > { %p981_p4 = por %p74_p13, %p73_p0  ;;  %p642_p5 = scmp.lt.s32.totalorder %s865_s20, 2 }
  0x1b   : > { %p970_p3 = pnand %p626_p12, %p935_p2  ;;  %s987_s7 = sand.u32 1, %s853_s17  }
  0x1c   : > { %s1210_s0 = sld [smem:[#allocation15_spill]] }
  0x1d   : > { %p704_p12 = pneg %p970_p3 }
  0x22   : > { %s702_s10 = scalar_lea.hbm %s1210_s0, 32 }
  0x23   : > { %p703_p9 = scmp.ne.s32.totalorder %s1210_s0, %s702_s10  ;;  %p709_p0 = scmp.lt.u32.totalorder %s702_s10, %s1210_s0 }
  0x25   : > { %p705_p11 = pnand %p704_p12, %p703_p9 }
  0x27   : > { %p706_p8 = pneg %p705_p11 }
  0x29   : > { %p711_p13 = pnand %p709_p0, %p706_p8 }
  0x2b   : > { %714 = shalt.err (!%p711_p13)
}
  0x2c   : > { %s867_s21 = smov [#allocation2]   ;;  %s1230_s29 = smov (%p974_p1, %s36_s29), 0 }
  0x2d   : > { %629 = dma.hbm_to_smem (!%p970_p3), %s1210_s0, 32, %s867_s21, [#allocation5]  }
  0x2e   : > { %1211 = sst [smem:[#allocation14_spill]] %s1230_s29  ;;  %s1193_s9 = sshll.u32 %s987_s7, 4 }
  0x2f   : > { %s61_s10 = ssub.s32 %s861_s19, %s1230_s29  ;;  %s613_s30 = sshll.u32 %s861_s19, 8 }
  0x30   : > { %p64_p8 = scmp.eq.s32.totalorder %s61_s10, 0  ;;  %s1212_s1 = sld [smem:[#allocation16_spill]] }
  0x31   : > { %s194_s14 = scalar_lea.vmem [#allocation6], %s1193_s9  ;;  %p1029_p11 = pnand %p642_p5, %p981_p4 }
  0x32   : > { %s204_s21 = sshll.u32 %s194_s14, 4  ;;  %s1036_s11 = scalar_lea.hbm %s1190_s2, %s613_s30  ;;  %s1023_s21 = int_to_ptr.vmem [resolvable:$true] %s204_s21 }
  0x33   : > { %s1021_s5 = scalar_select %p64_p8, %s853_s17, %s66_s28  }
  0x34   : > { %s191_s12 = scalar_lea.sflag [#allocation3], %s987_s7  ;;  %p717_p1 = pneg %p1029_p11 }
  0x36   : > { %s1016_s13 = scalar_lea.hbm %s1212_s1, %s613_s30  ;;  %s720_s14 = scalar_lea.hbm %s1212_s1, 512 }
  0x37   : > { %s715_s9 = scalar_lea.hbm %s1016_s13, 256  ;;  %p721_p4 = scmp.lt.u32.totalorder %s1016_s13, %s1212_s1 }
  0x38   : > { %p716_p3 = scmp.ne.s32.totalorder %s1016_s13, %s715_s9  ;;  %p722_p5 = scmp.lt.u32.totalorder %s720_s14, %s715_s9 }
  0x39   : > { %p724_p13 = scmp.lt.u32.totalorder %s715_s9, %s1016_s13 }
  0x3a   : > { %p718_p9 = pnand %p717_p1, %p716_p3  ;;  %p723_p0 = por %p722_p5, %p721_p4 }
  0x3c   : > { %p719_p12 = pneg %p718_p9  ;;  %p725_p8 = por %p724_p13, %p723_p0 }
  0x3e   : > { %p726_p7 = pnand %p725_p8, %p719_p12 }
  0x40   : > { %729 = shalt.err (!%p726_p7)
}
  0x41   : > { %s730_s30 = scalar_lea.vmem %s1023_s21, 256  ;;  %s868_s8 = smov [#allocation6]  }
  0x42   : > { %p731_p3 = scmp.ne.s32.totalorder %s1023_s21, %s730_s30  ;;  %s735_s10 = sshll.u32 %s868_s8, 4  ;;  %s736_s10 = int_to_ptr.vmem [resolvable:$false] %s735_s10 }
  0x43   : > { %s737_s0 = scalar_lea.vmem %s736_s10, 512  ;;  %p738_p2 = scmp.lt.s32.totalorder %s1023_s21, %s736_s10 }
  0x44   : > { %p733_p9 = pnand %p731_p3, %p717_p1  ;;  %p739_p4 = scmp.lt.s32.totalorder %s737_s0, %s730_s30 }
  0x46   : > { %p734_p6 = pneg %p733_p9  ;;  %p740_p5 = por %p739_p4, %p738_p2 }
  0x48   : > { %p741_p0 = pnand %p740_p5, %p734_p6 }
  0x4a   : > { %744 = shalt.err (!%p741_p0)
}
  0x4b   : > { %633 = dma.hbm_to_vmem [thread:$0]  (!%p1029_p11), %s1016_s13, 256, %s1023_s21, %s191_s12  }
  0x4c   : > { %s1214_s29 = sshll.u32 %s987_s7, 4  ;;  %s212_s6 = scalar_lea.sflag [#allocation8], %s987_s7 }
  0x4d   : > { %s215_s9 = scalar_lea.vmem [#allocation7], %s1214_s29  ;;  %s745_s14 = scalar_lea.hbm %s1036_s11, 256 }
  0x4e   : > { %s225_s28 = sshll.u32 %s215_s9, 4  ;;  %p746_p2 = scmp.ne.s32.totalorder %s1036_s11, %s745_s14  ;;  %s226_s28 = int_to_ptr.vmem [resolvable:$true] %s225_s28 }
  0x4f   : > { %s750_s10 = scalar_lea.hbm %s1190_s2, 512  ;;  %p751_p12 = scmp.lt.u32.totalorder %s1036_s11, %s1190_s2 }
  0x50   : > { %p748_p6 = pnand %p746_p2, %p717_p1  ;;  %p752_p13 = scmp.lt.u32.totalorder %s750_s10, %s745_s14 }
  0x51   : > { %p754_p3 = scmp.lt.u32.totalorder %s745_s14, %s1036_s11 }
  0x52   : > { %p749_p7 = pneg %p748_p6  ;;  %p753_p8 = por %p752_p13, %p751_p12 }
  0x54   : > { %p755_p9 = por %p754_p3, %p753_p8 }
  0x56   : > { %p756_p4 = pnand %p755_p9, %p749_p7 }
  0x58   : > { %759 = shalt.err (!%p756_p4)
}
  0x59   : > { %s760_s7 = scalar_lea.vmem %s226_s28, 256  ;;  %s869_s13 = smov [#allocation7]  }
  0x5a   : > { %p761_p5 = scmp.ne.s32.totalorder %s226_s28, %s760_s7  ;;  %s765_s21 = sshll.u32 %s869_s13, 4  ;;  %s766_s21 = int_to_ptr.vmem [resolvable:$false] %s765_s21 }
  0x5b   : > { %s767_s12 = scalar_lea.vmem %s766_s21, 512  ;;  %p768_p6 = scmp.lt.s32.totalorder %s226_s28, %s766_s21 }
  0x5c   : > { %p763_p0 = pnand %p761_p5, %p717_p1  ;;  %p769_p10 = scmp.lt.s32.totalorder %s767_s12, %s760_s7 }
  0x5e   : > { %p764_p2 = pneg %p763_p0  ;;  %p770_p12 = por %p769_p10, %p768_p6 }
  0x60   : > { %p771_p13 = pnand %p770_p12, %p764_p2 }
  0x62   : > { %774 = shalt.err (!%p771_p13)
}
  0x63   : > { %636 = dma.hbm_to_vmem [thread:$0]  (!%p1029_p11), %s1036_s11, 256, %s226_s28, %s212_s6  }
  0x64   : > { %p1215_p7 = scmp.ne.s32.totalorder %s1206_s27, 0 }
  0x65   : > { %p1216_p8 = scmp.ne.s32.totalorder (!%p1215_p7), %s1202_s23, 0 }
  0x66   : > { %234 = sbr.rel (%p1215_p7) target bundleno = 406 (0x196), region = 36 }
  0x6d   : > { %828 = dma.done.wait (%p1216_p8), [#allocation5], 32  }
  0x6e   : > { %830 = vsyncadd (%p1216_p8), [#allocation5], 4294967264  ;;  %s1093_s1 = sand.u32 1, %s849_s16   ;;  %p1217_p10 = scmp.ne.s32.totalorder %s1203_s24, 0 }
  0x6f   : > { %s603_s29 = sshll.u32 %s1093_s1, 4  ;;  %s241_s9 = scalar_lea.sflag [#allocation3], %s1093_s1 }
  0x70   : > { %s244_s22 = scalar_lea.vmem [#allocation6], %s603_s29 }
  0x71   : > { %832 = dma.done.wait (%p1217_p10), %s241_s9, 256  }
  0x72   : > { %834 = vsyncadd (%p1217_p10), %s241_s9, 4294967040  ;;  %s250_s27 = scalar_lea.sflag [#allocation8], %s1093_s1  ;;  %s253_s11 = scalar_lea.vmem [#allocation7], %s603_s29 }
  0x73   : > { %836 = dma.done.wait (%p1217_p10), %s250_s27, 256  }
  0x74   : > { %838 = vsyncadd (%p1217_p10), %s250_s27, 4294967040 }
  0x75   : > { %258 = sfence }
  0x76   : > { %s1107_s23 = sshll.u32 %s857_s18, 7  ;;  %s605_s28 = sshll.u32 %s1093_s1, 1  ;;  %v290_v0 = vlaneseq  ;;  %v870_v1 = vmov 0.0   ;;  %v316_v3 = vld [vmem:[%s1191_s3] sm:$0xff]  ;;  %v871_v4 = vmov 8   ;;  %v297_v6 = vld [vmem:[%s253_s11] sm:$0xff] }
  0x77   : > { %s300_s6 = sld [smem:[#allocation2 + %s1107_s23]]  ;;  %s301_s14 = sadd.s32 1, %s1107_s23  ;;  %392 = vmatprep.mubr.f32.mxu0 %v870_v1  ;;  %697 = vset.pattern.permute.xlu0 %v871_v4  ;;  %v298_v5 = vld [vmem:[%s253_s11 + $0x8] sm:$0xff]  ;;  %v295_v9 = vld [vmem:[%s244_s22] sm:$0xff]  ;;  %vm325_vm1 = vcmask 64512  }
  0x78   : > { %s302_s30 = sld [smem:[#allocation2 + %s301_s14]]  ;;  %s305_s8 = sadd.s32 3, %s1107_s23  ;;  %vm1114_vm0 = vcmp.lt.s32.totalorder %v290_v0, 256  ;;  %322 = vperm.xlu0 %697, %v316_v3   ;;  %v296_v7 = vld [vmem:[%s244_s22 + $0x8] sm:$0xff]  ;;  %v872_v45 = vmov 1966171168  }
  0x79   : > { %s306_s24 = sld [smem:[#allocation2 + %s305_s8]]  ;;  %s1121_s7 = scalar_lea.vmem [#allocation9], %s605_s28  ;;  %v436_v46 = vunpack.c.l.s4 %v872_v45  ;;  %v439_v52 = vshrl.u32 %v290_v0, 7 }
  0x7a   : > { %294 = vst.msk [vmem:[%s1121_s7] sm:$0x3] %vm1114_vm0, %v870_v1  ;;  %s307_s13 = sadd.s32 4, %s1107_s23  ;;  %s303_s12 = sadd.s32 2, %s1107_s23 }
  0x7b   : > { %s308_s21 = sld [smem:[#allocation2 + %s307_s13]]  ;;  %s309_s9 = sadd.s32 5, %s1107_s23  ;;  %v437_v51 = vunpack.c.0.s8 %v436_v46 }
  0x7c   : > { %s304_s29 = sld [smem:[#allocation2 + %s303_s12]]  ;;  %s615_s27 = sshll.u32 %s857_s18, 5 }
  0x7d   : > { %v311_v8 = vstv %s300_s6  ;;  %s310_s22 = sld [smem:[#allocation2 + %s309_s9]]  ;;  %v440_v57 = vsub.s32 %v437_v51, %v439_v52  ;;  %s471_s11 = sshll.u32 %s1121_s7, 4  ;;  %s1138_s11 = int_to_ptr.vmem [resolvable:$true] %s471_s11 }
  0x7e   : > { %v313_v10 = vmul.f32 %v311_v8, %v298_v5  ;;  %v312_v11 = vmul.f32 %v311_v8, %v297_v6  ;;  %v404_v13 = vstv %s302_s30  ;;  %s1136_s6 = scalar_lea.hbm %s1192_s4, %s615_s27  ;;  %s457_s14 = scalar_lea.sflag [#allocation4], %s1093_s1 }
  0x7f   : > { %v317_v12 = vstv %s306_s24  ;;  %s775_s30 = scalar_lea.vmem %s1138_s11, 32  ;;  %p1220_p1 = scmp.ne.s32.totalorder %s1204_s25, 0 }
  0x80   : > { %v315_v14 = vadd.f32 %v313_v10, %v296_v7  ;;  %v314_v15 = vadd.f32 %v312_v11, %v295_v9  ;;  %p776_p11 = scmp.ne.s32.totalorder %s1138_s11, %s775_s30  ;;  %s873_s18 = smov [#allocation9]  }
  0x81   : > { %v399_v22 = vstv %s308_s21  ;;  %v419_v61 = vld [vmem:[%s1121_s7] sm:$0x3]  ;;  %s779_s8 = sshll.u32 %s873_s18, 4  ;;  %s780_s8 = int_to_ptr.vmem [resolvable:$false] %s779_s8 }
  0x82   : > { %v319_v16 = vmul.f32 %v317_v12, %v315_v14  ;;  %v406_v17 = vmul.f32 %v404_v13, %v315_v14  ;;  %v318_v18 = vmul.f32 %v317_v12, %v314_v15  ;;  %v405_v19 = vmul.f32 %v404_v13, %v314_v15  ;;  %p777_p3 = pnand %p776_p11, %p1220_p1  ;;  %s781_s24 = scalar_lea.vmem %s780_s8, 64 }
  0x83   : > { %v407_v28 = vstv %s304_s29  ;;  %v416_v36 = vstv %s310_s22  ;;  %p782_p4 = scmp.lt.s32.totalorder %s1138_s11, %s780_s8  ;;  %p783_p5 = scmp.lt.s32.totalorder %s781_s24, %s775_s30 }
  0x84   : > { %328 = vmatprep.subr.mxu0 %v319_v16  ;;  %p778_p9 = pneg %p777_p3 }
  0x85   : > { %329 = vmatpush1.msra.mxu0 %v318_v18  ;;  %p784_p0 = por %p783_p5, %p782_p4 }
  0x86   : > { %607 = vmatmul.mubr.msk.f32.vlgmr.msra.gmra.mrb[0].mxu0 %vm325_vm1, %v316_v3 }
  0x87   : > { %p785_p2 = pnand %p784_p0, %p778_p9 }
  0xf7   : > { %v323_v20 = vpop.permute.xlu0 %322 }
 0x159   : > { %v394_v21 = vpop.f32.mrb[0].mxu0 }
 0x15a   : > { %v395_v23 = vadd.f32 %v394_v21, %v323_v20  ;;  %v396_v24 = vpop.f32.mrb[1].mxu0 }
 0x15b   : > { %v397_v25 = vadd.f32 %v396_v24, %v323_v20 }
 0x15c   : > { %v400_v26 = vadd.f32 %v399_v22, %v395_v23 }
 0x15d   : > { %v401_v27 = vadd.f32 %v399_v22, %v397_v25 }
 0x15e   : > { %698 = vtanh.f32 %v400_v26 }
 0x15f   : > { %700 = vtanh.f32 %v401_v27 }
 0x168   : > { %v699_v29 = vpop.eup %698 }
 0x169   : > { %v701_v30 = vpop.eup %700  ;;  %v408_v31 = vmul.f32 %v699_v29, %v407_v28 }
 0x16a   : > { %v409_v32 = vmul.f32 %v701_v30, %v407_v28 }
 0x16b   : > { %v410_v33 = vadd.f32 %v408_v31, %v405_v19 }
 0x16c   : > { %v411_v34 = vadd.f32 %v409_v32, %v406_v17 }
 0x16d   : > { %v412_v35 = vsub.f32 %v410_v33, %v295_v9 }
 0x16e   : > { %v413_v37 = vsub.f32 %v411_v34, %v296_v7 }
 0x16f   : > { %v414_v38 = vmul.f32 %v412_v35, %v412_v35 }
 0x170   : > { %v415_v39 = vmul.f32 %v413_v37, %v413_v37 }
 0x171   : > { %v417_v40 = vmul.f32 %v416_v36, %v414_v38 }
 0x172   : > { %v418_v41 = vmul.f32 %v416_v36, %v415_v39 }
 0x173   : > { %v420_v42 = vrot.slane %v417_v40, 4 }
 0x174   : > { %v426_v43 = vrot.slane %v418_v41, 4 }
 0x175   : > { %v421_v44 = vadd.f32 %v420_v42, %v417_v40 }
 0x176   : > { %v427_v47 = vadd.f32 %v426_v43, %v418_v41 }
 0x177   : > { %v422_v48 = vrot.slane %v421_v44, 2 }
 0x178   : > { %v428_v49 = vrot.slane %v427_v47, 2 }
 0x179   : > { %v423_v50 = vadd.f32 %v422_v48, %v421_v44 }
 0x17a   : > { %v429_v53 = vadd.f32 %v428_v49, %v427_v47 }
 0x17b   : > { %v424_v54 = vrot.slane %v423_v50, 1 }
 0x17c   : > { %v430_v55 = vrot.slane %v429_v53, 1 }
 0x17d   : > { %v425_v56 = vadd.f32 %v424_v54, %v423_v50 }
 0x17e   : > { %v431_v58 = vadd.f32 %v430_v55, %v429_v53 }
 0x180   : > { %v434_v59 = vcombine.low %v425_v56, %v431_v58 }
 0x182   : > { %v441_v60 = vrot.slane %v434_v59, %v440_v57 }
 0x184   : > { %v448_v62 = vrot.slane %v441_v60, %v440_v57 }
 0x186   : > { %v450_v63 = vadd.f32 %v448_v62, %v419_v61 }
 0x188   : > { %455 = vst.msk [vmem:[%s1121_s7] sm:$0x3] %vm1114_vm0, %v450_v63 }
 0x189   : > { %788 = shalt.err (!%p785_p2)
}
 0x18a   : > { %s789_s1 = scalar_lea.hbm %s1136_s6, 32  ;;  %s793_s7 = scalar_lea.hbm %s1192_s4, 64 }
 0x18b   : > { %p790_p6 = scmp.ne.s32.totalorder %s1136_s6, %s789_s1  ;;  %p794_p7 = scmp.lt.u32.totalorder %s1136_s6, %s1192_s4 }
 0x18c   : > { %p795_p8 = scmp.lt.u32.totalorder %s793_s7, %s789_s1  ;;  %p797_p11 = scmp.lt.u32.totalorder %s789_s1, %s1136_s6 }
 0x18d   : > { %p791_p12 = pnand %p790_p6, %p1220_p1 }
 0x18e   : > { %p796_p10 = por %p795_p8, %p794_p7 }
 0x18f   : > { %p792_p13 = pneg %p791_p12 }
 0x190   : > { %p798_p3 = por %p797_p11, %p796_p10 }
 0x192   : > { %p799_p9 = pnand %p798_p3, %p792_p13 }
 0x194   : > { %802 = shalt.err (!%p799_p9)
}
 0x195   : > { %624 = dma.vmem_to_hbm [thread:$0]  (%p1220_p1), %s1138_s11, 32, %s1136_s6, %s457_s14  }
 0x196 PF: > { %s483_s12 = sand.u32 1, %s845_s15   ;;  %p1221_p4 = scmp.ne.s32.totalorder %s1205_s26, 0 }
 0x197   : > { %p1222_p5 = scmp.ge.s32.totalorder %s865_s20, 2  ;;  %s484_s29 = scalar_lea.sflag [#allocation4], %s483_s12 }
 0x199   : > { %p638_p0 = pnand %p1222_p5, %p1221_p4 }
 0x19b   : > { %840 = dma.done.wait (!%p638_p0), %s484_s29, 32  }
 0x19c   : > { %842 = vsyncadd (!%p638_p0), %s484_s29, 4294967264  ;;  %s24_s20 = sadd.s32 1, %s865_s20   ;;  %s1223_s25 = sld [smem:[#allocation14_spill]] }
 0x19d   : > { %p21_p2 = scmp.ge.s32.totalorder %s24_s20, 4   ;;  %s1224_s15 = smov %s849_s16 }
 0x19e   : > { %s1225_s16 = smov %s853_s17  ;;  %s1226_s17 = smov %s1021_s5 }
 0x19f   : > { %s1227_s18 = smov %s861_s19  ;;  %23 = sbr.rel (!%p21_p2) target bundleno = 12 (0xc), region = 103 }
 0x1a2   : > { %s1228_s19 = smov %s1223_s25 }
 0x1a6   :  { %489 = vsyncpa [#allocation3], 1 }
 0x1a7   :  { %491 = vsyncpa [#allocation3 + $0x1], 1 }
 0x1a8   :  { %492 = vsyncpa [#allocation8], 1 }
 0x1a9   :  { %494 = vsyncpa [#allocation8 + $0x1], 1 }
 0x1aa   :  { %495 = vsyncpa [#allocation4], 1 }
 0x1ab   :  { %497 = vsyncpa [#allocation4 + $0x1], 1 }
 0x1ac   :  { %498 = vsyncpa [#allocation5], 1 }
 0x1ad   :  { %500 = vsyncpa [#allocation5 + $0x1], 1 }

</bundles_post_ra>
